<compile_context>
chip_gen: v6e
topology: v6e:2x2x1
jax: 0.10.0
libtpu: 0.0.40
codegen_flags: <defaults>
</compile_context>

<pallas_src>
import functools

import jax
import jax.numpy as jnp
from jax.experimental import pallas as pl
from jax.experimental.pallas import tpu as pltpu


# ----------------------------------------------------------------------------
# Pallas kernels
# ----------------------------------------------------------------------------
def _fused_matmul_kernel(a_ref, b_ref, shift_ref, o_ref, *, apply_relu):
    """out = relu?( (A @ B_scaled) + shift ) — conv-as-matmul + folded BN + ReLU.

    A and B arrive in bf16; accumulation and epilogue are f32.
    """
    acc = jnp.dot(a_ref[...], b_ref[...], preferred_element_type=jnp.float32)
    out = acc + shift_ref[...]
    if apply_relu:
        out = jnp.maximum(out, 0.0)
    o_ref[...] = out


def _patch_pool_sigmoid_kernel(a_ref, w_ref, bias_ref, o_ref, *, inv_num_patches):
    """Fused patch_pred (K->1 contraction) + global average pool + sigmoid.

    a_ref: (B, P, K) patches, w_ref: (1, 1, K) weight vector, bias_ref: (1, 1).
    Output: (B, 1) sigmoid scores.  Tiny problem -> VPU multiply-reduce.
    """
    prod = a_ref[...] * w_ref[...]                       # (B, P, K)
    patch_logits = jnp.sum(prod, axis=-1)                # (B, P)
    pooled = jnp.sum(patch_logits, axis=-1, keepdims=True) * inv_num_patches
    o_ref[...] = jax.nn.sigmoid(pooled + bias_ref[...])  # (B, 1)


# ----------------------------------------------------------------------------
# Wrappers around pallas_call
# ----------------------------------------------------------------------------
def _round_up(x, m):
    return ((x + m - 1) // m) * m


def _choose_tm(M, max_tm=512):
    """Pick the M-axis tile: big tiles (low per-step overhead), but keep the
    grid length >= 2 so both TensorCores get work on v7x megacore."""
    if M <= 16:
        return _round_up(M, 8)
    half = _round_up((M + 1) // 2, 8)
    return min(max_tm, half)


def fused_conv_matmul(a, b_scaled, shift, *, apply_relu, tm):
    """a: (M, K) im2col patches (f32), b_scaled: (K, N) BN-scale-folded weight.

    Only M is padded (to a multiple of tm); K and N stay unpadded since the
    blocks cover their full extent.  A/B are cast to bf16 for the MXU.
    """
    M, K = a.shape
    K2, N = b_scaled.shape
    assert K == K2

    Mp = _round_up(M, tm)
    a_bf = a.astype(jnp.bfloat16)
    if Mp != M:
        a_bf = jnp.pad(a_bf, ((0, Mp - M), (0, 0)))
    b_bf = b_scaled.astype(jnp.bfloat16)
    shift2d = shift.reshape(1, N).astype(jnp.float32)

    out = pl.pallas_call(
        functools.partial(_fused_matmul_kernel, apply_relu=apply_relu),
        out_shape=jax.ShapeDtypeStruct((Mp, N), jnp.float32),
        grid=(Mp // tm,),
        in_specs=[
            pl.BlockSpec((tm, K), lambda i: (i, 0)),
            pl.BlockSpec((K, N), lambda i: (0, 0)),
            pl.BlockSpec((1, N), lambda i: (0, 0)),
        ],
        out_specs=pl.BlockSpec((tm, N), lambda i: (i, 0)),
        compiler_params=pltpu.CompilerParams(
            dimension_semantics=("parallel",),
        ),
    )(a_bf, b_bf, shift2d)
    return out[:M]


def patch_pool_sigmoid(a3, w_vec, bias):
    """a3: (B, P, K) patches, w_vec: (1, 1, K), bias: (1, 1) -> (B,) scores."""
    B, P, K = a3.shape
    out = pl.pallas_call(
        functools.partial(_patch_pool_sigmoid_kernel, inv_num_patches=1.0 / P),
        out_shape=jax.ShapeDtypeStruct((B, 1), jnp.float32),
        grid=(1,),
        in_specs=[
            pl.BlockSpec((B, P, K), lambda i: (0, 0, 0)),
            pl.BlockSpec((1, 1, K), lambda i: (0, 0, 0)),
            pl.BlockSpec((1, 1), lambda i: (0, 0)),
        ],
        out_specs=pl.BlockSpec((B, 1), lambda i: (0, 0)),
    )(a3.astype(jnp.float32), w_vec.astype(jnp.float32), bias.astype(jnp.float32))
    return out[:, 0]


# ----------------------------------------------------------------------------
# Glue: im2col patch extraction (pure JAX reshuffling, no compute)
# ----------------------------------------------------------------------------
def im2col(x, k, stride):
    """x: (N, H, W, C) NHWC -> ((N*Ho*Wo, k*k*C), Ho, Wo); feature order (ki, kj, c)."""
    N, H, W, C = x.shape
    Ho = (H - k) // stride + 1
    Wo = (W - k) // stride + 1
    cols = []
    for i in range(k):
        for j in range(k):
            cols.append(
                x[:, i:i + stride * (Ho - 1) + 1:stride,
                     j:j + stride * (Wo - 1) + 1:stride, :]
            )
    p = jnp.concatenate(cols, axis=-1)           # (N, Ho, Wo, k*k*C)
    return p.reshape(N * Ho * Wo, k * k * C), Ho, Wo


# ----------------------------------------------------------------------------
# Parameter init (deterministic, synthetic — mirrors the nn.Module shapes)
# ----------------------------------------------------------------------------
def init_params(key, in_channels):
    def conv_init(k, cout, cin, ksz):
        kw, kb = jax.random.split(k)
        fan_in = cin * ksz * ksz
        w = jax.random.normal(kw, (cout, cin, ksz, ksz), jnp.float32) / jnp.sqrt(fan_in)
        b = 0.01 * jax.random.normal(kb, (cout,), jnp.float32)
        return w, b

    def bn_init(k, c):
        k1, k2, k3, k4 = jax.random.split(k, 4)
        gamma = 1.0 + 0.1 * jax.random.normal(k1, (c,), jnp.float32)
        beta = 0.1 * jax.random.normal(k2, (c,), jnp.float32)
        mean = 0.1 * jax.random.normal(k3, (c,), jnp.float32)
        var = 1.0 + 0.1 * jax.random.uniform(k4, (c,), jnp.float32)
        return gamma, beta, mean, var

    keys = jax.random.split(key, 8)
    params = {}
    chans = [(in_channels, 64), (64, 128), (128, 256)]
    for idx, (cin, cout) in enumerate(chans):
        w, b = conv_init(keys[2 * idx], cout, cin, 4)
        gamma, beta, mean, var = bn_init(keys[2 * idx + 1], cout)
        params[f"conv{idx + 1}"] = (w, b, gamma, beta, mean, var)
    w, b = conv_init(keys[6], 1, 256, 5)
    params["patch_pred"] = (w, b)
    return params


# ----------------------------------------------------------------------------
# Forward pass (Pallas hot path)
# ----------------------------------------------------------------------------
def discriminator_forward(params, x_nchw):
    eps = 1e-5
    x = jnp.transpose(x_nchw, (0, 2, 3, 1))  # NCHW -> NHWC
    N = x.shape[0]

    # Three ConvBlocks: Conv2d(k=4, s=2, valid) + BatchNorm(eval) + ReLU.
    for name in ("conv1", "conv2", "conv3"):
        w, b, gamma, beta, mean, var = params[name]
        cout, cin, k, _ = w.shape
        a, Ho, Wo = im2col(x, k, 2)
        w_mat = jnp.transpose(w, (2, 3, 1, 0)).reshape(k * k * cin, cout)
        scale = gamma / jnp.sqrt(var + eps)
        shift = beta + (b - mean) * scale
        w_scaled = w_mat * scale[None, :]        # fold BN scale into the weights
        tm = _choose_tm(a.shape[0])
        y = fused_conv_matmul(a, w_scaled, shift, apply_relu=True, tm=tm)
        x = y.reshape(N, Ho, Wo, cout)

    # patch_pred (256 -> 1, k=5, s=1, valid) + adaptive_avg_pool2d(1) + sigmoid,
    # fused into one kernel.
    w, b = params["patch_pred"]
    cout, cin, k, _ = w.shape                    # cout == 1
    a, Ho, Wo = im2col(x, k, 1)
    K = k * k * cin
    P = Ho * Wo
    a3 = a.reshape(N, P, K)
    w_vec = jnp.transpose(w, (2, 3, 1, 0)).reshape(K, cout)[:, 0].reshape(1, 1, K)
    scores = patch_pool_sigmoid(a3, w_vec, b.reshape(1, 1))
    return jnp.squeeze(scores)


# ----------------------------------------------------------------------------
# Pure-JAX reference (for correctness check)
# ----------------------------------------------------------------------------
def reference_forward(params, x_nchw):
    eps = 1e-5

    def conv(x, w, b, stride):
        y = jax.lax.conv_general_dilated(
            x, w, (stride, stride), "VALID",
            dimension_numbers=("NCHW", "OIHW", "NCHW"))
        return y + b[None, :, None, None]

    x = x_nchw
    for name in ("conv1", "conv2", "conv3"):
        w, b, g, be, m, v = params[name]
        y = conv(x, w, b, 2)
        y = (y - m[None, :, None, None]) / jnp.sqrt(v + eps)[None, :, None, None]
        y = y * g[None, :, None, None] + be[None, :, None, None]
        x = jnp.maximum(y, 0.0)
    w, b = params["patch_pred"]
    y = conv(x, w, b, 1)
    y = jnp.mean(y, axis=(2, 3), keepdims=True)
    return jnp.squeeze(jax.nn.sigmoid(y))


if __name__ == "__main__":
    key = jax.random.PRNGKey(0)
    kp, kx = jax.random.split(key)

    in_channels = 3
    batch, H, W = 2, 64, 64  # 64 -> 31 -> 14 -> 6 -> 2x2 patches -> pool -> (2,)
    params = init_params(kp, in_channels)
    x = jax.random.normal(kx, (batch, in_channels, H, W), jnp.float32)

    out = discriminator_forward(params, x)
    out = jax.block_until_ready(out)

    ref = jax.block_until_ready(reference_forward(params, x))
    assert out.shape == ref.shape == (batch,), (out.shape, ref.shape)
    # bf16 matmul inputs (f32 accumulation) -> slightly looser tolerance vs f32 ref.
    assert jnp.allclose(out, ref, atol=3e-2), (out, ref)

    print("KERNEL_OK")
</pallas_src>

<mosaic_0001>
module attributes {stable_mosaic.version = 11 : i64} {
  func.func @_fused_matmul_kernel(%arg0: i32, %arg1: memref<512x48xbf16, #tpu.memory_space<vmem>>, %arg2: memref<48x64xbf16, #tpu.memory_space<vmem>>, %arg3: memref<1x64xf32, #tpu.memory_space<vmem>>, %arg4: memref<512x64xf32, #tpu.memory_space<vmem>>) attributes {dimension_semantics = [#tpu.dimension_semantics<parallel>], iteration_bounds = array<i64: 4>, scalar_prefetch = 0 : i64, scratch_operands = 0 : i64, tpu.core_type = #tpu.core_type<tc>, window_params = [{transform_indices = @transform_0, window_bounds = array<i64: 512, 48>}, {pipeline_mode = #tpu.pipeline_mode<synchronous>, transform_indices = @transform_1, window_bounds = array<i64: 48, 64>}, {pipeline_mode = #tpu.pipeline_mode<synchronous>, transform_indices = @transform_2, window_bounds = array<i64: 1, 64>}, {transform_indices = @transform_3, window_bounds = array<i64: 512, 64>}]} {
    %c0 = arith.constant 0 : index
    %c0_0 = arith.constant 0 : index
    %0 = vector.load %arg1[%c0, %c0_0] : memref<512x48xbf16, #tpu.memory_space<vmem>>, vector<512x48xbf16>
    %c0_1 = arith.constant 0 : index
    %c0_2 = arith.constant 0 : index
    %1 = vector.load %arg2[%c0_1, %c0_2] : memref<48x64xbf16, #tpu.memory_space<vmem>>, vector<48x64xbf16>
    %cst = arith.constant dense<0.000000e+00> : vector<512x64xf32>
    %2 = tpu.matmul %0, %1, %cst {dimension_numbers = #tpu.dot_dimension_numbers<[1], [0], [0], [1], [0, 0, 1, 1], [], []>} : vector<512x48xbf16>, vector<48x64xbf16>, vector<512x64xf32> -> vector<512x64xf32>
    %c0_3 = arith.constant 0 : index
    %c0_4 = arith.constant 0 : index
    %3 = vector.load %arg3[%c0_3, %c0_4] : memref<1x64xf32, #tpu.memory_space<vmem>>, vector<1x64xf32>
    %4 = vector.broadcast %3 : vector<1x64xf32> to vector<512x64xf32>
    %5 = arith.addf %2, %4 : vector<512x64xf32>
    %cst_5 = arith.constant 0.000000e+00 : f32
    %6 = vector.broadcast %cst_5 : f32 to vector<512x64xf32>
    %7 = arith.maximumf %5, %6 : vector<512x64xf32>
    %c0_6 = arith.constant 0 : index
    %c0_7 = arith.constant 0 : index
    %8 = vector.load %arg4[%c0_6, %c0_7] : memref<512x64xf32, #tpu.memory_space<vmem>>, vector<512x64xf32>
    tpu.vector_store %arg4[%c0_6, %c0_7], %7 {strides = array<i32>} : memref<512x64xf32, #tpu.memory_space<vmem>>, vector<512x64xf32>,
    return
  }
  func.func @transform_0(%arg0: i32) -> (i32, i32) {
    %c0_i32 = arith.constant 0 : i32
    %c0_i32_0 = arith.constant 0 : i32
    return %arg0, %c0_i32 : i32, i32
  }
  func.func @transform_1(%arg0: i32) -> (i32, i32) {
    %c0_i32 = arith.constant 0 : i32
    %c0_i32_0 = arith.constant 0 : i32
    %c0_i32_1 = arith.constant 0 : i32
    return %c0_i32, %c0_i32_0 : i32, i32
  }
  func.func @transform_2(%arg0: i32) -> (i32, i32) {
    %c0_i32 = arith.constant 0 : i32
    %c0_i32_0 = arith.constant 0 : i32
    %c0_i32_1 = arith.constant 0 : i32
    return %c0_i32, %c0_i32_0 : i32, i32
  }
  func.func @transform_3(%arg0: i32) -> (i32, i32) {
    %c0_i32 = arith.constant 0 : i32
    %c0_i32_0 = arith.constant 0 : i32
    return %arg0, %c0_i32 : i32, i32
  }
}

</mosaic_0001>

<bundles_post_ra>
// kernel: tpu_custom_call.1
= control target key start
LH: loop header
LB: loop body
LE: loop exit
PB: predicated region body
PF: predicated region fallthrough
CT: control target
= control target key end

     0   :  { %s1262_s12 = smov 0   ;;  %s1557_s0 = inlined_call_operand.vmem [shape: bf16[2048,48], index: 0, kind: input, shape index: {}]   ;;  %s1558_s1 = inlined_call_operand.vmem [shape: bf16[48,64], index: 1, kind: input, shape index: {}]   ;;  %s1559_s2 = inlined_call_operand.vmem [shape: f32[1,64], index: 2, kind: input, shape index: {}]   ;;  %s1560_s3 = inlined_call_operand.vmem [shape: f32[2048,64], index: 3, kind: output, shape index: {}]  }
   0x1 LB: > { %s1001_s13 = sadd.s32 4294967295, %s1240_s12   ;;  %p1005_p0 = scmp.ge.s32.totalorder %s1240_s12, 1  ;;  %s1240_s12 = sphi %s1262_s12, %s13_s12  }
   0x2   : > { %p138_p1 = scmp.lt.s32.totalorder %s1240_s12, 5 }
   0x4   : > { %p139_p2 = pnand %p1005_p0, %p138_p1 }
   0x5   : > { %s1006_s16 = sshll.u32 (!%p139_p2), %s1001_s13, 6 }
   0x6   : > { %142 = sbr.rel (%p139_p2) target bundleno = 284 (0x11c), region = 32  ;;  %p163_p3 = scmp.lt.s32.totalorder (!%p139_p2), %s1006_s16, 255 }
   0xb   : > { %v1199_v0 = vld [vmem:[%s1558_s1 + $0x10] sm:$0xff]   ;;  %v1200_v1 = vld [vmem:[%s1558_s1 + $0x8] sm:$0xff]   ;;  %s1562_s16 = smov (!%p163_p3, %s1006_s16), 255  ;;  %v1201_v2 = vld [vmem:[%s1558_s1] sm:$0xff]   ;;  %vm430_vm0 = vcmask 392192   ;;  %vm880_vm1 = vcmask 523264  }
   0xc   : > { %1115 = vmatprep.subr.bf16.mxu0 %v1199_v0  ;;  %1185 = vmatprep.subr.bf16.mxu1 %v1199_v0  ;;  %s1007_s21 = sshll.u32 %s1562_s16, 2  ;;  %v1354_v35 = vld [vmem:[%s1559_s2] ss:$0 sm:$0xff]  ;;  %s1009_s27 = sshll.u32 %s1562_s16, 3 }
   0xd   : > { %1116 = vmatpush3.bf16.msra.mxu0 %v1199_v0  ;;  %1188 = vmatpush3.bf16.msra.mxu1 %v1199_v0  ;;  %s1285_s24 = scalar_lea.vmem %s1557_s0, %s1007_s21  ;;  %s1362_s30 = scalar_lea.vmem %s1560_s3, %s1009_s27 }
   0xe   : > { %1117 = vmatprep.subr.bf16.mxu0 %v1200_v1  ;;  %1186 = vmatprep.subr.bf16.mxu1 %v1200_v1  ;;  %v1202_v3 = vld [vmem:[%s1285_s24] sm:$0xff]   ;;  %v1204_v5 = vld [vmem:[%s1285_s24 + $0x8] sm:$0xff]   ;;  %v1206_v7 = vld [vmem:[%s1285_s24 + $0x10] sm:$0xff]  }
   0xf   : > { %v1203_v4 = vld [vmem:[%s1285_s24 + $0x80] sm:$0xff]   ;;  %1121 = vmatprep.mubr.msk.bf16.mxu0 %vm430_vm0, %v1202_v3  ;;  %v1205_v6 = vld [vmem:[%s1285_s24 + $0x88] sm:$0xff]   ;;  %v1207_v8 = vld [vmem:[%s1285_s24 + $0x90] sm:$0xff]  }
  0x10   : > { %1153 = vmatprep.mubr.msk.bf16.mxu1 %vm430_vm0, %v1203_v4  ;;  %v1208_v9 = vld [vmem:[%s1285_s24 + $0x18] sm:$0xff]   ;;  %v1210_v11 = vld [vmem:[%s1285_s24 + $0x20] sm:$0xff]   ;;  %v1212_v13 = vld [vmem:[%s1285_s24 + $0x28] sm:$0xff]  }
  0x11   : > { %1118 = vmatpush3.bf16.msra.mxu0 %v1200_v1  ;;  %1189 = vmatpush3.bf16.msra.mxu1 %v1200_v1  ;;  %v1209_v10 = vld [vmem:[%s1285_s24 + $0x98] sm:$0xff]   ;;  %v1211_v12 = vld [vmem:[%s1285_s24 + $0xa0] sm:$0xff]   ;;  %v1213_v14 = vld [vmem:[%s1285_s24 + $0xa8] sm:$0xff]  }
  0x12   : > { %1119 = vmatprep.subr.bf16.mxu0 %v1201_v2  ;;  %1187 = vmatprep.subr.bf16.mxu1 %v1201_v2  ;;  %v1214_v15 = vld [vmem:[%s1285_s24 + $0x30] sm:$0xff]   ;;  %v1216_v17 = vld [vmem:[%s1285_s24 + $0x38] sm:$0xff]   ;;  %v1218_v19 = vld [vmem:[%s1285_s24 + $0x40] sm:$0xff]  }
  0x13   : > { %v1215_v16 = vld [vmem:[%s1285_s24 + $0xb0] sm:$0xff]   ;;  %v1217_v18 = vld [vmem:[%s1285_s24 + $0xb8] sm:$0xff]   ;;  %v1219_v20 = vld [vmem:[%s1285_s24 + $0xc0] sm:$0xff]  }
  0x14   : > { %v1220_v21 = vld [vmem:[%s1285_s24 + $0x48] sm:$0xff]   ;;  %v1222_v23 = vld [vmem:[%s1285_s24 + $0x50] sm:$0xff]   ;;  %v1224_v25 = vld [vmem:[%s1285_s24 + $0x58] sm:$0xff]  }
  0x15   : > { %1120 = vmatpush3.bf16.msra.mxu0 %v1201_v2  ;;  %1190 = vmatpush3.bf16.msra.mxu1 %v1201_v2  ;;  %v1221_v22 = vld [vmem:[%s1285_s24 + $0xc8] sm:$0xff]   ;;  %v1223_v24 = vld [vmem:[%s1285_s24 + $0xd0] sm:$0xff]   ;;  %v1225_v26 = vld [vmem:[%s1285_s24 + $0xd8] sm:$0xff]  }
  0x16   : > { %v1226_v27 = vld [vmem:[%s1285_s24 + $0x60] sm:$0xff]   ;;  %v1228_v29 = vld [vmem:[%s1285_s24 + $0x68] sm:$0xff]   ;;  %v1230_v31 = vld [vmem:[%s1285_s24 + $0x70] sm:$0xff]  }
  0x17   : > { %v1227_v28 = vld [vmem:[%s1285_s24 + $0xe0] sm:$0xff]   ;;  %v1229_v30 = vld [vmem:[%s1285_s24 + $0xe8] sm:$0xff]   ;;  %v1231_v32 = vld [vmem:[%s1285_s24 + $0xf0] sm:$0xff]  }
  0x18   : > { %1122 = vmatmul.mubr.msk.bf16.vlgmr.msra.gmra.mxu0 %vm430_vm0, %v1204_v5  ;;  %1154 = vmatmul.mubr.msk.bf16.vlgmr.msra.gmra.mxu1 %vm430_vm0, %v1205_v6  ;;  %v1232_v33 = vld [vmem:[%s1285_s24 + $0x78] sm:$0xff]  }
  0x19   : > { %1125 = vmatprep.mubr.msk.bf16.mxu0 %vm430_vm0, %v1206_v7  ;;  %1157 = vmatprep.mubr.msk.bf16.mxu1 %vm430_vm0, %v1207_v8  ;;  %v1233_v34 = vld [vmem:[%s1285_s24 + $0xf8] sm:$0xff]  }
  0x20   : > { %1126 = vmatmul.mubr.msk.bf16.gmra.mxu0 %vm430_vm0, %v1208_v9  ;;  %1158 = vmatmul.mubr.msk.bf16.gmra.mxu1 %vm430_vm0, %v1209_v10 }
  0x21   : > { %1129 = vmatprep.mubr.msk.bf16.mxu0 %vm430_vm0, %v1210_v11  ;;  %1161 = vmatprep.mubr.msk.bf16.mxu1 %vm430_vm0, %v1211_v12 }
  0x28   : > { %1130 = vmatmul.mubr.msk.bf16.gmra.mxu0 %vm430_vm0, %v1212_v13  ;;  %1162 = vmatmul.mubr.msk.bf16.gmra.mxu1 %vm430_vm0, %v1213_v14 }
  0x29   : > { %1133 = vmatprep.mubr.msk.bf16.mxu0 %vm430_vm0, %v1214_v15  ;;  %1165 = vmatprep.mubr.msk.bf16.mxu1 %vm430_vm0, %v1215_v16 }
  0x30   : > { %1134 = vmatmul.mubr.msk.bf16.gmra.mxu0 %vm430_vm0, %v1216_v17  ;;  %1166 = vmatmul.mubr.msk.bf16.gmra.mxu1 %vm430_vm0, %v1217_v18 }
  0x31   : > { %1137 = vmatprep.mubr.msk.bf16.mxu0 %vm430_vm0, %v1218_v19  ;;  %1169 = vmatprep.mubr.msk.bf16.mxu1 %vm430_vm0, %v1219_v20 }
  0x38   : > { %1138 = vmatmul.mubr.msk.bf16.gmra.mxu0 %vm430_vm0, %v1220_v21  ;;  %1170 = vmatmul.mubr.msk.bf16.gmra.mxu1 %vm430_vm0, %v1221_v22 }
  0x39   : > { %1141 = vmatprep.mubr.msk.bf16.mxu0 %vm430_vm0, %v1222_v23  ;;  %1173 = vmatprep.mubr.msk.bf16.mxu1 %vm430_vm0, %v1223_v24 }
  0x40   : > { %1142 = vmatmul.mubr.msk.bf16.gmra.mxu0 %vm430_vm0, %v1224_v25  ;;  %1174 = vmatmul.mubr.msk.bf16.gmra.mxu1 %vm430_vm0, %v1225_v26 }
  0x41   : > { %1145 = vmatprep.mubr.msk.bf16.mxu0 %vm430_vm0, %v1226_v27  ;;  %1177 = vmatprep.mubr.msk.bf16.mxu1 %vm430_vm0, %v1227_v28 }
  0x48   : > { %1146 = vmatmul.mubr.msk.bf16.gmra.mxu0 %vm430_vm0, %v1228_v29  ;;  %1178 = vmatmul.mubr.msk.bf16.gmra.mxu1 %vm430_vm0, %v1229_v30 }
  0x49   : > { %1149 = vmatprep.mubr.msk.bf16.mxu0 %vm430_vm0, %v1230_v31  ;;  %1181 = vmatprep.mubr.msk.bf16.mxu1 %vm430_vm0, %v1231_v32 }
  0x50   : > { %1150 = vmatmul.mubr.msk.bf16.gmra.mxu0 %vm430_vm0, %v1232_v33  ;;  %1182 = vmatmul.mubr.msk.bf16.gmra.mxu1 %vm430_vm0, %v1233_v34 }
  0xd8   : > { %v1123_v36 = vpop.f32.mrf.mxu0  ;;  %v1155_v37 = vpop.f32.mrf.mxu1 }
  0xd9   : > { %v570_v38 = vadd.f32 %v1123_v36, %v1354_v35  ;;  %v698_v39 = vadd.f32 %v1155_v37, %v1354_v35 }
  0xda   : > { %v561_v40 = vpop.f32.mrf.mxu0  ;;  %v689_v41 = vpop.f32.mrf.mxu1 }
  0xdb   : > { %v818_v42 = vmax.f32 %v570_v38, 0.0  ;;  %v850_v43 = vmax.f32 %v698_v39, 0.0  ;;  %v562_v44 = vadd.f32 %v1354_v35, %v561_v40  ;;  %v690_v45 = vadd.f32 %v1354_v35, %v689_v41 }
  0xdc   : > { %v1124_v46 = vpop.f32.mrf.mxu0  ;;  %v1156_v47 = vpop.f32.mrf.mxu1 }
  0xdd   : > { %883 = vst.msk [vmem:[%s1362_s30 + $0x10] sm:$0xff] %vm880_vm1, %v818_v42  ;;  %915 = vst.msk [vmem:[%s1362_s30 + $0x110] sm:$0xff] %vm880_vm1, %v850_v43  ;;  %v816_v48 = vmax.f32 %v562_v44, 0.0  ;;  %v848_v49 = vmax.f32 %v690_v45, 0.0  ;;  %v573_v50 = vadd.f32 %v1124_v46, %v1354_v35  ;;  %v701_v51 = vadd.f32 %v1156_v47, %v1354_v35 }
  0xde   : > { %v564_v52 = vpop.f32.mrf.mxu0  ;;  %v692_v53 = vpop.f32.mrf.mxu1 }
  0xdf   : > { %881 = vst.msk [vmem:[%s1362_s30] sm:$0xff] %vm880_vm1, %v816_v48  ;;  %913 = vst.msk [vmem:[%s1362_s30 + $0x100] sm:$0xff] %vm880_vm1, %v848_v49  ;;  %v819_v54 = vmax.f32 %v573_v50, 0.0  ;;  %v851_v55 = vmax.f32 %v701_v51, 0.0  ;;  %v565_v56 = vadd.f32 %v1354_v35, %v564_v52  ;;  %v693_v57 = vadd.f32 %v1354_v35, %v692_v53 }
  0xe0   : > { %v1127_v58 = vpop.f32.mrf.mxu0  ;;  %v1159_v59 = vpop.f32.mrf.mxu1 }
  0xe1   : > { %884 = vst.msk [vmem:[%s1362_s30 + $0x18] sm:$0xff] %vm880_vm1, %v819_v54  ;;  %916 = vst.msk [vmem:[%s1362_s30 + $0x118] sm:$0xff] %vm880_vm1, %v851_v55  ;;  %v817_v60 = vmax.f32 %v565_v56, 0.0  ;;  %v849_v61 = vmax.f32 %v693_v57, 0.0  ;;  %v586_v62 = vadd.f32 %v1127_v58, %v1354_v35  ;;  %v714_v63 = vadd.f32 %v1159_v59, %v1354_v35 }
  0xe2   : > { %v577_v0 = vpop.f32.mrf.mxu0  ;;  %v705_v1 = vpop.f32.mrf.mxu1 }
  0xe3   : > { %882 = vst.msk [vmem:[%s1362_s30 + $0x8] sm:$0xff] %vm880_vm1, %v817_v60  ;;  %914 = vst.msk [vmem:[%s1362_s30 + $0x108] sm:$0xff] %vm880_vm1, %v849_v61  ;;  %v822_v2 = vmax.f32 %v586_v62, 0.0  ;;  %v854_v3 = vmax.f32 %v714_v63, 0.0  ;;  %v578_v4 = vadd.f32 %v1354_v35, %v577_v0  ;;  %v706_v5 = vadd.f32 %v1354_v35, %v705_v1 }
  0xe4   : > { %v1128_v6 = vpop.f32.mrf.mxu0  ;;  %v1160_v7 = vpop.f32.mrf.mxu1 }
  0xe5   : > { %887 = vst.msk [vmem:[%s1362_s30 + $0x30] sm:$0xff] %vm880_vm1, %v822_v2  ;;  %919 = vst.msk [vmem:[%s1362_s30 + $0x130] sm:$0xff] %vm880_vm1, %v854_v3  ;;  %v820_v8 = vmax.f32 %v578_v4, 0.0  ;;  %v852_v9 = vmax.f32 %v706_v5, 0.0  ;;  %v589_v10 = vadd.f32 %v1128_v6, %v1354_v35  ;;  %v717_v11 = vadd.f32 %v1160_v7, %v1354_v35 }
  0xe6   : > { %v580_v12 = vpop.f32.mrf.mxu0  ;;  %v708_v13 = vpop.f32.mrf.mxu1 }
  0xe7   : > { %885 = vst.msk [vmem:[%s1362_s30 + $0x20] sm:$0xff] %vm880_vm1, %v820_v8  ;;  %917 = vst.msk [vmem:[%s1362_s30 + $0x120] sm:$0xff] %vm880_vm1, %v852_v9  ;;  %v823_v14 = vmax.f32 %v589_v10, 0.0  ;;  %v855_v15 = vmax.f32 %v717_v11, 0.0  ;;  %v581_v16 = vadd.f32 %v1354_v35, %v580_v12  ;;  %v709_v17 = vadd.f32 %v1354_v35, %v708_v13 }
  0xe8   : > { %v1131_v18 = vpop.f32.mrf.mxu0  ;;  %v1163_v19 = vpop.f32.mrf.mxu1 }
  0xe9   : > { %888 = vst.msk [vmem:[%s1362_s30 + $0x38] sm:$0xff] %vm880_vm1, %v823_v14  ;;  %920 = vst.msk [vmem:[%s1362_s30 + $0x138] sm:$0xff] %vm880_vm1, %v855_v15  ;;  %v821_v20 = vmax.f32 %v581_v16, 0.0  ;;  %v853_v21 = vmax.f32 %v709_v17, 0.0  ;;  %v602_v22 = vadd.f32 %v1131_v18, %v1354_v35  ;;  %v730_v23 = vadd.f32 %v1163_v19, %v1354_v35 }
  0xea   : > { %v593_v24 = vpop.f32.mrf.mxu0  ;;  %v721_v25 = vpop.f32.mrf.mxu1 }
  0xeb   : > { %886 = vst.msk [vmem:[%s1362_s30 + $0x28] sm:$0xff] %vm880_vm1, %v821_v20  ;;  %918 = vst.msk [vmem:[%s1362_s30 + $0x128] sm:$0xff] %vm880_vm1, %v853_v21  ;;  %v826_v26 = vmax.f32 %v602_v22, 0.0  ;;  %v858_v27 = vmax.f32 %v730_v23, 0.0  ;;  %v594_v28 = vadd.f32 %v1354_v35, %v593_v24  ;;  %v722_v29 = vadd.f32 %v1354_v35, %v721_v25 }
  0xec   : > { %v1132_v30 = vpop.f32.mrf.mxu0  ;;  %v1164_v31 = vpop.f32.mrf.mxu1 }
  0xed   : > { %891 = vst.msk [vmem:[%s1362_s30 + $0x50] sm:$0xff] %vm880_vm1, %v826_v26  ;;  %923 = vst.msk [vmem:[%s1362_s30 + $0x150] sm:$0xff] %vm880_vm1, %v858_v27  ;;  %v824_v32 = vmax.f32 %v594_v28, 0.0  ;;  %v856_v33 = vmax.f32 %v722_v29, 0.0  ;;  %v605_v34 = vadd.f32 %v1132_v30, %v1354_v35  ;;  %v733_v36 = vadd.f32 %v1164_v31, %v1354_v35 }
  0xee   : > { %v596_v37 = vpop.f32.mrf.mxu0  ;;  %v724_v38 = vpop.f32.mrf.mxu1 }
  0xef   : > { %889 = vst.msk [vmem:[%s1362_s30 + $0x40] sm:$0xff] %vm880_vm1, %v824_v32  ;;  %921 = vst.msk [vmem:[%s1362_s30 + $0x140] sm:$0xff] %vm880_vm1, %v856_v33  ;;  %v827_v39 = vmax.f32 %v605_v34, 0.0  ;;  %v859_v40 = vmax.f32 %v733_v36, 0.0  ;;  %v597_v41 = vadd.f32 %v1354_v35, %v596_v37  ;;  %v725_v42 = vadd.f32 %v1354_v35, %v724_v38 }
  0xf0   : > { %v1135_v43 = vpop.f32.mrf.mxu0  ;;  %v1167_v44 = vpop.f32.mrf.mxu1 }
  0xf1   : > { %892 = vst.msk [vmem:[%s1362_s30 + $0x58] sm:$0xff] %vm880_vm1, %v827_v39  ;;  %924 = vst.msk [vmem:[%s1362_s30 + $0x158] sm:$0xff] %vm880_vm1, %v859_v40  ;;  %v825_v45 = vmax.f32 %v597_v41, 0.0  ;;  %v857_v46 = vmax.f32 %v725_v42, 0.0  ;;  %v618_v47 = vadd.f32 %v1135_v43, %v1354_v35  ;;  %v746_v48 = vadd.f32 %v1167_v44, %v1354_v35 }
  0xf2   : > { %v609_v49 = vpop.f32.mrf.mxu0  ;;  %v737_v50 = vpop.f32.mrf.mxu1 }
  0xf3   : > { %890 = vst.msk [vmem:[%s1362_s30 + $0x48] sm:$0xff] %vm880_vm1, %v825_v45  ;;  %922 = vst.msk [vmem:[%s1362_s30 + $0x148] sm:$0xff] %vm880_vm1, %v857_v46  ;;  %v830_v51 = vmax.f32 %v618_v47, 0.0  ;;  %v862_v52 = vmax.f32 %v746_v48, 0.0  ;;  %v610_v53 = vadd.f32 %v1354_v35, %v609_v49  ;;  %v738_v54 = vadd.f32 %v1354_v35, %v737_v50 }
  0xf4   : > { %v1136_v55 = vpop.f32.mrf.mxu0  ;;  %v1168_v56 = vpop.f32.mrf.mxu1 }
  0xf5   : > { %895 = vst.msk [vmem:[%s1362_s30 + $0x70] sm:$0xff] %vm880_vm1, %v830_v51  ;;  %927 = vst.msk [vmem:[%s1362_s30 + $0x170] sm:$0xff] %vm880_vm1, %v862_v52  ;;  %v828_v57 = vmax.f32 %v610_v53, 0.0  ;;  %v860_v58 = vmax.f32 %v738_v54, 0.0  ;;  %v621_v59 = vadd.f32 %v1136_v55, %v1354_v35  ;;  %v749_v60 = vadd.f32 %v1168_v56, %v1354_v35 }
  0xf6   : > { %v612_v61 = vpop.f32.mrf.mxu0  ;;  %v740_v62 = vpop.f32.mrf.mxu1 }
  0xf7   : > { %893 = vst.msk [vmem:[%s1362_s30 + $0x60] sm:$0xff] %vm880_vm1, %v828_v57  ;;  %925 = vst.msk [vmem:[%s1362_s30 + $0x160] sm:$0xff] %vm880_vm1, %v860_v58  ;;  %v831_v63 = vmax.f32 %v621_v59, 0.0  ;;  %v863_v0 = vmax.f32 %v749_v60, 0.0  ;;  %v613_v1 = vadd.f32 %v1354_v35, %v612_v61  ;;  %v741_v2 = vadd.f32 %v1354_v35, %v740_v62 }
  0xf8   : > { %v1139_v3 = vpop.f32.mrf.mxu0  ;;  %v1171_v4 = vpop.f32.mrf.mxu1 }
  0xf9   : > { %896 = vst.msk [vmem:[%s1362_s30 + $0x78] sm:$0xff] %vm880_vm1, %v831_v63  ;;  %928 = vst.msk [vmem:[%s1362_s30 + $0x178] sm:$0xff] %vm880_vm1, %v863_v0  ;;  %v829_v5 = vmax.f32 %v613_v1, 0.0  ;;  %v861_v6 = vmax.f32 %v741_v2, 0.0  ;;  %v634_v7 = vadd.f32 %v1139_v3, %v1354_v35  ;;  %v762_v8 = vadd.f32 %v1171_v4, %v1354_v35 }
  0xfa   : > { %v625_v9 = vpop.f32.mrf.mxu0  ;;  %v753_v10 = vpop.f32.mrf.mxu1 }
  0xfb   : > { %894 = vst.msk [vmem:[%s1362_s30 + $0x68] sm:$0xff] %vm880_vm1, %v829_v5  ;;  %926 = vst.msk [vmem:[%s1362_s30 + $0x168] sm:$0xff] %vm880_vm1, %v861_v6  ;;  %v834_v11 = vmax.f32 %v634_v7, 0.0  ;;  %v866_v12 = vmax.f32 %v762_v8, 0.0  ;;  %v626_v13 = vadd.f32 %v1354_v35, %v625_v9  ;;  %v754_v14 = vadd.f32 %v1354_v35, %v753_v10 }
  0xfc   : > { %v1140_v15 = vpop.f32.mrf.mxu0  ;;  %v1172_v16 = vpop.f32.mrf.mxu1 }
  0xfd   : > { %899 = vst.msk [vmem:[%s1362_s30 + $0x90] sm:$0xff] %vm880_vm1, %v834_v11  ;;  %931 = vst.msk [vmem:[%s1362_s30 + $0x190] sm:$0xff] %vm880_vm1, %v866_v12  ;;  %v832_v17 = vmax.f32 %v626_v13, 0.0  ;;  %v864_v18 = vmax.f32 %v754_v14, 0.0  ;;  %v637_v19 = vadd.f32 %v1140_v15, %v1354_v35  ;;  %v765_v20 = vadd.f32 %v1172_v16, %v1354_v35 }
  0xfe   : > { %v628_v21 = vpop.f32.mrf.mxu0  ;;  %v756_v22 = vpop.f32.mrf.mxu1 }
  0xff   : > { %897 = vst.msk [vmem:[%s1362_s30 + $0x80] sm:$0xff] %vm880_vm1, %v832_v17  ;;  %929 = vst.msk [vmem:[%s1362_s30 + $0x180] sm:$0xff] %vm880_vm1, %v864_v18  ;;  %v835_v23 = vmax.f32 %v637_v19, 0.0  ;;  %v867_v24 = vmax.f32 %v765_v20, 0.0  ;;  %v629_v25 = vadd.f32 %v1354_v35, %v628_v21  ;;  %v757_v26 = vadd.f32 %v1354_v35, %v756_v22 }
 0x100   : > { %v1143_v27 = vpop.f32.mrf.mxu0  ;;  %v1175_v28 = vpop.f32.mrf.mxu1 }
 0x101   : > { %900 = vst.msk [vmem:[%s1362_s30 + $0x98] sm:$0xff] %vm880_vm1, %v835_v23  ;;  %932 = vst.msk [vmem:[%s1362_s30 + $0x198] sm:$0xff] %vm880_vm1, %v867_v24  ;;  %v833_v29 = vmax.f32 %v629_v25, 0.0  ;;  %v865_v30 = vmax.f32 %v757_v26, 0.0  ;;  %v650_v31 = vadd.f32 %v1143_v27, %v1354_v35  ;;  %v778_v32 = vadd.f32 %v1175_v28, %v1354_v35 }
 0x102   : > { %v641_v33 = vpop.f32.mrf.mxu0  ;;  %v769_v34 = vpop.f32.mrf.mxu1 }
 0x103   : > { %898 = vst.msk [vmem:[%s1362_s30 + $0x88] sm:$0xff] %vm880_vm1, %v833_v29  ;;  %930 = vst.msk [vmem:[%s1362_s30 + $0x188] sm:$0xff] %vm880_vm1, %v865_v30  ;;  %v838_v36 = vmax.f32 %v650_v31, 0.0  ;;  %v870_v37 = vmax.f32 %v778_v32, 0.0  ;;  %v642_v38 = vadd.f32 %v1354_v35, %v641_v33  ;;  %v770_v39 = vadd.f32 %v1354_v35, %v769_v34 }
 0x104   : > { %v1144_v40 = vpop.f32.mrf.mxu0  ;;  %v1176_v41 = vpop.f32.mrf.mxu1 }
 0x105   : > { %903 = vst.msk [vmem:[%s1362_s30 + $0xb0] sm:$0xff] %vm880_vm1, %v838_v36  ;;  %935 = vst.msk [vmem:[%s1362_s30 + $0x1b0] sm:$0xff] %vm880_vm1, %v870_v37  ;;  %v836_v42 = vmax.f32 %v642_v38, 0.0  ;;  %v868_v43 = vmax.f32 %v770_v39, 0.0  ;;  %v653_v44 = vadd.f32 %v1144_v40, %v1354_v35  ;;  %v781_v45 = vadd.f32 %v1176_v41, %v1354_v35 }
 0x106   : > { %v644_v46 = vpop.f32.mrf.mxu0  ;;  %v772_v47 = vpop.f32.mrf.mxu1 }
 0x107   : > { %901 = vst.msk [vmem:[%s1362_s30 + $0xa0] sm:$0xff] %vm880_vm1, %v836_v42  ;;  %933 = vst.msk [vmem:[%s1362_s30 + $0x1a0] sm:$0xff] %vm880_vm1, %v868_v43  ;;  %v839_v48 = vmax.f32 %v653_v44, 0.0  ;;  %v871_v49 = vmax.f32 %v781_v45, 0.0  ;;  %v645_v50 = vadd.f32 %v1354_v35, %v644_v46  ;;  %v773_v51 = vadd.f32 %v1354_v35, %v772_v47 }
 0x108   : > { %v1147_v52 = vpop.f32.mrf.mxu0  ;;  %v1179_v53 = vpop.f32.mrf.mxu1 }
 0x109   : > { %904 = vst.msk [vmem:[%s1362_s30 + $0xb8] sm:$0xff] %vm880_vm1, %v839_v48  ;;  %936 = vst.msk [vmem:[%s1362_s30 + $0x1b8] sm:$0xff] %vm880_vm1, %v871_v49  ;;  %v837_v54 = vmax.f32 %v645_v50, 0.0  ;;  %v869_v55 = vmax.f32 %v773_v51, 0.0  ;;  %v666_v56 = vadd.f32 %v1147_v52, %v1354_v35  ;;  %v794_v57 = vadd.f32 %v1179_v53, %v1354_v35 }
 0x10a   : > { %v657_v58 = vpop.f32.mrf.mxu0  ;;  %v785_v59 = vpop.f32.mrf.mxu1 }
 0x10b   : > { %902 = vst.msk [vmem:[%s1362_s30 + $0xa8] sm:$0xff] %vm880_vm1, %v837_v54  ;;  %934 = vst.msk [vmem:[%s1362_s30 + $0x1a8] sm:$0xff] %vm880_vm1, %v869_v55  ;;  %v842_v60 = vmax.f32 %v666_v56, 0.0  ;;  %v874_v61 = vmax.f32 %v794_v57, 0.0  ;;  %v658_v62 = vadd.f32 %v1354_v35, %v657_v58  ;;  %v786_v63 = vadd.f32 %v1354_v35, %v785_v59 }
 0x10c   : > { %v1148_v0 = vpop.f32.mrf.mxu0  ;;  %v1180_v1 = vpop.f32.mrf.mxu1 }
 0x10d   : > { %907 = vst.msk [vmem:[%s1362_s30 + $0xd0] sm:$0xff] %vm880_vm1, %v842_v60  ;;  %939 = vst.msk [vmem:[%s1362_s30 + $0x1d0] sm:$0xff] %vm880_vm1, %v874_v61  ;;  %v840_v2 = vmax.f32 %v658_v62, 0.0  ;;  %v872_v3 = vmax.f32 %v786_v63, 0.0  ;;  %v669_v4 = vadd.f32 %v1148_v0, %v1354_v35  ;;  %v797_v5 = vadd.f32 %v1180_v1, %v1354_v35 }
 0x10e   : > { %v660_v6 = vpop.f32.mrf.mxu0  ;;  %v788_v7 = vpop.f32.mrf.mxu1 }
 0x10f   : > { %905 = vst.msk [vmem:[%s1362_s30 + $0xc0] sm:$0xff] %vm880_vm1, %v840_v2  ;;  %937 = vst.msk [vmem:[%s1362_s30 + $0x1c0] sm:$0xff] %vm880_vm1, %v872_v3  ;;  %v843_v8 = vmax.f32 %v669_v4, 0.0  ;;  %v875_v9 = vmax.f32 %v797_v5, 0.0  ;;  %v661_v10 = vadd.f32 %v1354_v35, %v660_v6  ;;  %v789_v11 = vadd.f32 %v1354_v35, %v788_v7 }
 0x110   : > { %v1151_v12 = vpop.f32.mrf.mxu0  ;;  %v1183_v13 = vpop.f32.mrf.mxu1 }
 0x111   : > { %908 = vst.msk [vmem:[%s1362_s30 + $0xd8] sm:$0xff] %vm880_vm1, %v843_v8  ;;  %940 = vst.msk [vmem:[%s1362_s30 + $0x1d8] sm:$0xff] %vm880_vm1, %v875_v9  ;;  %v841_v14 = vmax.f32 %v661_v10, 0.0  ;;  %v873_v15 = vmax.f32 %v789_v11, 0.0  ;;  %v682_v16 = vadd.f32 %v1151_v12, %v1354_v35  ;;  %v810_v17 = vadd.f32 %v1183_v13, %v1354_v35 }
 0x112   : > { %v673_v18 = vpop.f32.mrf.mxu0  ;;  %v801_v19 = vpop.f32.mrf.mxu1 }
 0x113   : > { %906 = vst.msk [vmem:[%s1362_s30 + $0xc8] sm:$0xff] %vm880_vm1, %v841_v14  ;;  %938 = vst.msk [vmem:[%s1362_s30 + $0x1c8] sm:$0xff] %vm880_vm1, %v873_v15  ;;  %v846_v20 = vmax.f32 %v682_v16, 0.0  ;;  %v878_v21 = vmax.f32 %v810_v17, 0.0  ;;  %v674_v22 = vadd.f32 %v1354_v35, %v673_v18  ;;  %v802_v23 = vadd.f32 %v1354_v35, %v801_v19 }
 0x114   : > { %v1152_v24 = vpop.f32.mrf.mxu0  ;;  %v1184_v25 = vpop.f32.mrf.mxu1 }
 0x115   : > { %911 = vst.msk [vmem:[%s1362_s30 + $0xf0] sm:$0xff] %vm880_vm1, %v846_v20  ;;  %943 = vst.msk [vmem:[%s1362_s30 + $0x1f0] sm:$0xff] %vm880_vm1, %v878_v21  ;;  %v844_v26 = vmax.f32 %v674_v22, 0.0  ;;  %v876_v27 = vmax.f32 %v802_v23, 0.0  ;;  %v685_v28 = vadd.f32 %v1152_v24, %v1354_v35  ;;  %v813_v29 = vadd.f32 %v1184_v25, %v1354_v35 }
 0x116   : > { %v676_v30 = vpop.f32.mrf.mxu0  ;;  %v804_v31 = vpop.f32.mrf.mxu1 }
 0x117   : > { %909 = vst.msk [vmem:[%s1362_s30 + $0xe0] sm:$0xff] %vm880_vm1, %v844_v26  ;;  %941 = vst.msk [vmem:[%s1362_s30 + $0x1e0] sm:$0xff] %vm880_vm1, %v876_v27  ;;  %v847_v32 = vmax.f32 %v685_v28, 0.0  ;;  %v879_v33 = vmax.f32 %v813_v29, 0.0  ;;  %v677_v34 = vadd.f32 %v1354_v35, %v676_v30  ;;  %v805_v36 = vadd.f32 %v1354_v35, %v804_v31 }
 0x119   : > { %912 = vst.msk [vmem:[%s1362_s30 + $0xf8] sm:$0xff] %vm880_vm1, %v847_v32  ;;  %944 = vst.msk [vmem:[%s1362_s30 + $0x1f8] sm:$0xff] %vm880_vm1, %v879_v33  ;;  %v845_v37 = vmax.f32 %v677_v34, 0.0  ;;  %v877_v38 = vmax.f32 %v805_v36, 0.0 }
 0x11b   : > { %910 = vst.msk [vmem:[%s1362_s30 + $0xe8] sm:$0xff] %vm880_vm1, %v845_v37  ;;  %942 = vst.msk [vmem:[%s1362_s30 + $0x1e8] sm:$0xff] %vm880_vm1, %v877_v38 }
 0x11c PF: > { %s13_s12 = sadd.s32 1, %s1240_s12  }
 0x11d   : > { %p10_p4 = scmp.ge.s32.totalorder %s13_s12, 6  }
 0x11f   :  { %12 = sbr.rel (!%p10_p4) target bundleno = 1 (0x1), region = 62 }

</bundles_post_ra>
